<compile_context>
chip_gen: v6e
topology: v6e:2x2x1
jax: 0.10.0
libtpu: 0.0.40
codegen_flags: <defaults>
</compile_context>

<pallas_src>
import math

import jax
import jax.numpy as jnp
from jax.experimental import pallas as pl
from jax.experimental.pallas import tpu as pltpu


def _round_up(x, m):
    return (x + m - 1) // m * m


# ---------------------------------------------------------------------------
# Pallas kernel: fused (tokens @ W + b) [+ LayerNorm], stored channels-first
# ---------------------------------------------------------------------------
def _make_patch_embed_kernel(use_norm, eps, out_dtype):
    if use_norm:
        def kernel(x_ref, w_ref, b_ref, g_ref, bb_ref, o_ref):
            acc = jnp.dot(x_ref[0], w_ref[...],
                          preferred_element_type=jnp.float32)        # (TT, E)
            out = acc + b_ref[...].astype(jnp.float32)
            mean = jnp.mean(out, axis=-1, keepdims=True)
            cent = out - mean
            var = jnp.mean(cent * cent, axis=-1, keepdims=True)
            out = cent * jax.lax.rsqrt(var + eps)
            out = (out * g_ref[...].astype(jnp.float32)
                   + bb_ref[...].astype(jnp.float32))
            # transpose in VMEM -> store is (E, TT): lane-dense token axis,
            # and the HBM result is already channels-first (no wrapper pass).
            o_ref[0] = out.T.astype(out_dtype)
    else:
        def kernel(x_ref, w_ref, b_ref, o_ref):
            acc = jnp.dot(x_ref[0], w_ref[...],
                          preferred_element_type=jnp.float32)
            out = acc + b_ref[...].astype(jnp.float32)
            o_ref[0] = out.T.astype(out_dtype)
    return kernel


def _choose_token_tile(T, N, block_t):
    """Token tile TT: legal as the output lane dim (multiple of 128 or == T),
    large (low per-step overhead), and giving >=2 grid steps when there is
    enough work (feeds both v7x TensorCores, keeps double-buffering alive)."""
    if T <= 128:
        return T                          # whole image per step (tiny case)
    tt = min(block_t, (T // 128) * 128)
    steps = -(-T // tt)
    if N * steps < 2 and tt > 128:
        tt = max(128, ((tt // 2) // 128) * 128)
    return tt


# ---------------------------------------------------------------------------
# Forward wrapper
# ---------------------------------------------------------------------------
def patch_embed_forward(params, x, *, patch_size=4, use_norm=False,
                        eps=1e-5, block_t=2048, compute_dtype=jnp.bfloat16):
    """x: (N, C, H, W) float32 (PyTorch NCHW). Returns (N, embed_dim, Wh, Ww)."""
    P = patch_size
    N, C, H, W = x.shape
    w = params['proj_w']                  # (E, C, P, P) -- PyTorch Conv2d layout
    b = params['proj_b']                  # (E,)
    E = w.shape[0]

    # 1) right / bottom zero pad (same as the F.pad calls in the reference)
    pad_h = (-H) % P
    pad_w = (-W) % P
    if pad_h or pad_w:
        x = jnp.pad(x, ((0, 0), (0, 0), (0, pad_h), (0, pad_w)))
    Hp, Wp = H + pad_h, W + pad_w
    Wh, Ww = Hp // P, Wp // P
    T = Wh * Ww                           # patches (tokens) per image
    K = C * P * P

    # 2) patchify (im2col).  Cast BEFORE the transpose so XLA fuses the
    #    convert into the relayout pass (halves its HBM write and the
    #    kernel's A-operand read).  K order (c, ph, pw) matches the
    #    flattened Conv2d weight, so one matmul reproduces the conv exactly.
    xc = x.astype(compute_dtype)
    cols = xc.reshape(N, C, Wh, P, Ww, P)
    cols = jnp.transpose(cols, (0, 2, 4, 1, 3, 5))     # (N, Wh, Ww, C, P, P)
    cols = cols.reshape(N, T, K)

    w2d = jnp.transpose(w.reshape(E, K)).astype(compute_dtype)   # (K, E)
    b2d = b.reshape(1, E).astype(jnp.float32)

    TT = _choose_token_tile(T, N, block_t)
    grid = (N, -(-T // TT))               # ragged last tile handled by Pallas

    kernel = _make_patch_embed_kernel(use_norm, eps, x.dtype)

    in_specs = [
        pl.BlockSpec((1, TT, K), lambda n, j: (n, j, 0)),
        pl.BlockSpec((K, E), lambda n, j: (0, 0)),
        pl.BlockSpec((1, E), lambda n, j: (0, 0)),
    ]
    args = [cols, w2d, b2d]
    if use_norm:
        in_specs += [pl.BlockSpec((1, E), lambda n, j: (0, 0)),
                     pl.BlockSpec((1, E), lambda n, j: (0, 0))]
        args += [params['ln_g'].reshape(1, E).astype(jnp.float32),
                 params['ln_b'].reshape(1, E).astype(jnp.float32)]

    out = pl.pallas_call(
        kernel,
        out_shape=jax.ShapeDtypeStruct((N, E, T), x.dtype),
        grid=grid,
        in_specs=in_specs,
        out_specs=pl.BlockSpec((1, E, TT), lambda n, j: (n, 0, j)),
        compiler_params=pltpu.CompilerParams(
            dimension_semantics=("parallel", "parallel")),
    )(*args)

    # 3) free row-major split back to the PyTorch (N, E, Wh, Ww) contract
    return out.reshape(N, E, Wh, Ww)


# ---------------------------------------------------------------------------
# Pure-JAX reference (for correctness verification)
# ---------------------------------------------------------------------------
def patch_embed_reference(params, x, *, patch_size=4, use_norm=False, eps=1e-5):
    P = patch_size
    N, C, H, W = x.shape
    pad_h = (-H) % P
    pad_w = (-W) % P
    if pad_h or pad_w:
        x = jnp.pad(x, ((0, 0), (0, 0), (0, pad_h), (0, pad_w)))
    y = jax.lax.conv_general_dilated(
        x, params['proj_w'], window_strides=(P, P), padding='VALID',
        dimension_numbers=('NCHW', 'OIHW', 'NCHW'),
        precision=jax.lax.Precision.HIGHEST)
    y = y + params['proj_b'].reshape(1, -1, 1, 1)
    if use_norm:
        Nn, E, Wh, Ww = y.shape
        t = jnp.transpose(y.reshape(Nn, E, Wh * Ww), (0, 2, 1))
        mean = t.mean(-1, keepdims=True)
        var = ((t - mean) ** 2).mean(-1, keepdims=True)
        t = (t - mean) / jnp.sqrt(var + eps)
        t = t * params['ln_g'] + params['ln_b']
        y = jnp.transpose(t, (0, 2, 1)).reshape(Nn, E, Wh, Ww)
    return y


# ---------------------------------------------------------------------------
# Deterministic parameter initialization (PyTorch Conv2d / LayerNorm layout)
# ---------------------------------------------------------------------------
def init_patch_embed_params(key, patch_size, in_channels, embed_dim, use_norm):
    kw, kb, kg, kbeta = jax.random.split(key, 4)
    fan_in = in_channels * patch_size * patch_size
    w = jax.random.normal(
        kw, (embed_dim, in_channels, patch_size, patch_size), jnp.float32)
    w = w / math.sqrt(fan_in)
    b = 0.02 * jax.random.normal(kb, (embed_dim,), jnp.float32)
    p = {'proj_w': w, 'proj_b': b}
    if use_norm:
        p['ln_g'] = 1.0 + 0.1 * jax.random.normal(kg, (embed_dim,), jnp.float32)
        p['ln_b'] = 0.02 * jax.random.normal(kbeta, (embed_dim,), jnp.float32)
    return p


# ---------------------------------------------------------------------------
if __name__ == "__main__":
    key = jax.random.PRNGKey(0)
    kx1, kx2, kp1, kp2 = jax.random.split(key, 4)

    patch_size, in_channels, embed_dim = 4, 3, 96

    fwd = jax.jit(patch_embed_forward,
                  static_argnames=("patch_size", "use_norm", "eps",
                                   "block_t", "compute_dtype"))

    # --- test 1: H, W not divisible by patch_size (exercises the pad branch),
    #             norm_layer = LayerNorm, exact f32 compute path --------------
    params1 = init_patch_embed_params(kp1, patch_size, in_channels, embed_dim,
                                      use_norm=True)
    x1 = jax.random.normal(kx1, (2, in_channels, 18, 18), jnp.float32)
    out1 = fwd(params1, x1, patch_size=patch_size, use_norm=True,
               compute_dtype=jnp.float32)
    ref1 = patch_embed_reference(params1, x1, patch_size=patch_size,
                                 use_norm=True)
    jax.block_until_ready(out1)
    assert out1.shape == (2, embed_dim, 5, 5)
    assert jnp.allclose(out1, ref1, rtol=2e-3, atol=2e-3)

    # --- test 2: larger image, norm_layer=None (module default), default
    #             bf16 matmul inputs with f32 accumulation -------------------
    params2 = init_patch_embed_params(kp2, patch_size, in_channels, embed_dim,
                                      use_norm=False)
    x2 = jax.random.normal(kx2, (2, in_channels, 64, 64), jnp.float32)
    out2 = fwd(params2, x2, patch_size=patch_size, use_norm=False)
    ref2 = patch_embed_reference(params2, x2, patch_size=patch_size,
                                 use_norm=False)
    jax.block_until_ready(out2)
    assert out2.shape == (2, embed_dim, 16, 16)
    assert jnp.allclose(out2, ref2, rtol=7e-2, atol=7e-2)   # bf16 inputs, f32 acc

    print("KERNEL_OK")
</pallas_src>

<mosaic_0001>
module attributes {stable_mosaic.version = 11 : i64} {
  func.func @kernel(%arg0: i32, %arg1: i32, %arg2: memref<1x25x48xf32, #tpu.memory_space<vmem>>, %arg3: memref<48x96xf32, #tpu.memory_space<vmem>>, %arg4: memref<1x96xf32, #tpu.memory_space<vmem>>, %arg5: memref<1x96xf32, #tpu.memory_space<vmem>>, %arg6: memref<1x96xf32, #tpu.memory_space<vmem>>, %arg7: memref<1x96x25xf32, #tpu.memory_space<vmem>>) attributes {dimension_semantics = [#tpu.dimension_semantics<parallel>, #tpu.dimension_semantics<parallel>], iteration_bounds = array<i64: 2, 1>, scalar_prefetch = 0 : i64, scratch_operands = 0 : i64, tpu.core_type = #tpu.core_type<tc>, window_params = [{transform_indices = @transform_0, window_bounds = array<i64: 1, 25, 48>}, {pipeline_mode = #tpu.pipeline_mode<synchronous>, transform_indices = @transform_1, window_bounds = array<i64: 48, 96>}, {pipeline_mode = #tpu.pipeline_mode<synchronous>, transform_indices = @transform_2, window_bounds = array<i64: 1, 96>}, {pipeline_mode = #tpu.pipeline_mode<synchronous>, transform_indices = @transform_3, window_bounds = array<i64: 1, 96>}, {pipeline_mode = #tpu.pipeline_mode<synchronous>, transform_indices = @transform_4, window_bounds = array<i64: 1, 96>}, {transform_indices = @transform_5, window_bounds = array<i64: 1, 96, 25>}]} {
    %c0 = arith.constant 0 : index
    %c0_0 = arith.constant 0 : index
    %c0_1 = arith.constant 0 : index
    %0 = vector.load %arg2[%c0, %c0_0, %c0_1] : memref<1x25x48xf32, #tpu.memory_space<vmem>>, vector<1x25x48xf32>
    %1 = vector.shape_cast %0 : vector<1x25x48xf32> to vector<25x48xf32>
    %c0_2 = arith.constant 0 : index
    %c0_3 = arith.constant 0 : index
    %2 = vector.load %arg3[%c0_2, %c0_3] : memref<48x96xf32, #tpu.memory_space<vmem>>, vector<48x96xf32>
    %cst = arith.constant dense<0.000000e+00> : vector<25x96xf32>
    %3 = tpu.matmul %1, %2, %cst {dimension_numbers = #tpu.dot_dimension_numbers<[1], [0], [0], [1], [0, 0, 1, 1], [], []>} : vector<25x48xf32>, vector<48x96xf32>, vector<25x96xf32> -> vector<25x96xf32>
    %c0_4 = arith.constant 0 : index
    %c0_5 = arith.constant 0 : index
    %4 = vector.load %arg4[%c0_4, %c0_5] : memref<1x96xf32, #tpu.memory_space<vmem>>, vector<1x96xf32>
    %5 = vector.broadcast %4 : vector<1x96xf32> to vector<25x96xf32>
    %6 = arith.addf %3, %5 : vector<25x96xf32>
    %cst_6 = arith.constant dense<0.000000e+00> : vector<25xf32>
    %7 = vector.multi_reduction <add>, %6, %cst_6 [1] : vector<25x96xf32> to vector<25xf32>
    %8 = vector.shape_cast %7 : vector<25xf32> to vector<25x1xf32>
    %cst_7 = arith.constant 9.600000e+01 : f32
    %9 = vector.broadcast %cst_7 : f32 to vector<25x1xf32>
    %10 = arith.divf %8, %9 : vector<25x1xf32>
    %11 = vector.broadcast %10 : vector<25x1xf32> to vector<25x96xf32>
    %12 = arith.subf %6, %11 : vector<25x96xf32>
    %13 = arith.mulf %12, %12 : vector<25x96xf32>
    %cst_8 = arith.constant dense<0.000000e+00> : vector<25xf32>
    %14 = vector.multi_reduction <add>, %13, %cst_8 [1] : vector<25x96xf32> to vector<25xf32>
    %15 = vector.shape_cast %14 : vector<25xf32> to vector<25x1xf32>
    %cst_9 = arith.constant 9.600000e+01 : f32
    %16 = vector.broadcast %cst_9 : f32 to vector<25x1xf32>
    %17 = arith.divf %15, %16 : vector<25x1xf32>
    %cst_10 = arith.constant 9.99999974E-6 : f32
    %18 = vector.broadcast %cst_10 : f32 to vector<25x1xf32>
    %19 = arith.addf %17, %18 : vector<25x1xf32>
    %20 = math.rsqrt %19 : vector<25x1xf32>
    %21 = vector.broadcast %20 : vector<25x1xf32> to vector<25x96xf32>
    %22 = arith.mulf %12, %21 : vector<25x96xf32>
    %c0_11 = arith.constant 0 : index
    %c0_12 = arith.constant 0 : index
    %23 = vector.load %arg5[%c0_11, %c0_12] : memref<1x96xf32, #tpu.memory_space<vmem>>, vector<1x96xf32>
    %24 = vector.broadcast %23 : vector<1x96xf32> to vector<25x96xf32>
    %25 = arith.mulf %22, %24 : vector<25x96xf32>
    %c0_13 = arith.constant 0 : index
    %c0_14 = arith.constant 0 : index
    %26 = vector.load %arg6[%c0_13, %c0_14] : memref<1x96xf32, #tpu.memory_space<vmem>>, vector<1x96xf32>
    %27 = vector.broadcast %26 : vector<1x96xf32> to vector<25x96xf32>
    %28 = arith.addf %25, %27 : vector<25x96xf32>
    %29 = tpu.transpose %28, [1, 0] : vector<25x96xf32> -> vector<96x25xf32>
    %c0_15 = arith.constant 0 : index
    %c0_16 = arith.constant 0 : index
    %c0_17 = arith.constant 0 : index
    %30 = vector.load %arg7[%c0_15, %c0_16, %c0_17] : memref<1x96x25xf32, #tpu.memory_space<vmem>>, vector<1x96x25xf32>
    %31 = vector.shape_cast %30 : vector<1x96x25xf32> to vector<96x25xf32>
    %32 = vector.shape_cast %29 : vector<96x25xf32> to vector<1x96x25xf32>
    tpu.vector_store %arg7[%c0_15, %c0_16, %c0_17], %32 {strides = array<i32>} : memref<1x96x25xf32, #tpu.memory_space<vmem>>, vector<1x96x25xf32>,
    return
  }
  func.func @transform_0(%arg0: i32, %arg1: i32) -> (i32, i32, i32) {
    %c0_i32 = arith.constant 0 : i32
    %c0_i32_0 = arith.constant 0 : i32
    return %arg0, %arg1, %c0_i32 : i32, i32, i32
  }
  func.func @transform_1(%arg0: i32, %arg1: i32) -> (i32, i32) {
    %c0_i32 = arith.constant 0 : i32
    %c0_i32_0 = arith.constant 0 : i32
    %c0_i32_1 = arith.constant 0 : i32
    return %c0_i32, %c0_i32_0 : i32, i32
  }
  func.func @transform_2(%arg0: i32, %arg1: i32) -> (i32, i32) {
    %c0_i32 = arith.constant 0 : i32
    %c0_i32_0 = arith.constant 0 : i32
    %c0_i32_1 = arith.constant 0 : i32
    return %c0_i32, %c0_i32_0 : i32, i32
  }
  func.func @transform_3(%arg0: i32, %arg1: i32) -> (i32, i32) {
    %c0_i32 = arith.constant 0 : i32
    %c0_i32_0 = arith.constant 0 : i32
    %c0_i32_1 = arith.constant 0 : i32
    return %c0_i32, %c0_i32_0 : i32, i32
  }
  func.func @transform_4(%arg0: i32, %arg1: i32) -> (i32, i32) {
    %c0_i32 = arith.constant 0 : i32
    %c0_i32_0 = arith.constant 0 : i32
    %c0_i32_1 = arith.constant 0 : i32
    return %c0_i32, %c0_i32_0 : i32, i32
  }
  func.func @transform_5(%arg0: i32, %arg1: i32) -> (i32, i32, i32) {
    %c0_i32 = arith.constant 0 : i32
    %c0_i32_0 = arith.constant 0 : i32
    return %arg0, %c0_i32, %arg1 : i32, i32, i32
  }
}

</mosaic_0001>

<bundles_post_ra>
// kernel: patch_embed_forward.1
= control target key start
LH: loop header
LB: loop body
LE: loop exit
PB: predicated region body
PF: predicated region fallthrough
CT: control target
= control target key end

     0   :  { %s727_s18 = smov 0   ;;  %s729_s19 = smov 0   ;;  %s811_s0 = inlined_call_operand.vmem [shape: f32[2,25,48], index: 0, kind: input, shape index: {}]   ;;  %s812_s1 = inlined_call_operand.vmem [shape: f32[48,96], index: 1, kind: input, shape index: {}]   ;;  %s813_s2 = inlined_call_operand.vmem [shape: f32[1,96], index: 2, kind: input, shape index: {}]   ;;  %s814_s3 = inlined_call_operand.vmem [shape: f32[1,96], index: 3, kind: input, shape index: {}]   ;;  %s815_s4 = inlined_call_operand.vmem [shape: f32[1,96], index: 4, kind: input, shape index: {}]   ;;  %s816_s5 = inlined_call_operand.vmem [shape: f32[2,96,25], index: 5, kind: output, shape index: {}]  }
   0x1   :  { %s731_s20 = smov 0  }
   0x2 LB: > { %s27_s21 = sadd.s32 1, %s691_s19  ;;  %p585_p0 = scmp.ge.s32.totalorder %s695_s20, 1  ;;  %s695_s20 = sphi %s731_s20, %s15_s20   ;;  %s691_s19 = sphi %s729_s19, %s818_s19   ;;  %s687_s18 = sphi %s727_s18, %s817_s18  }
   0x3   : > { %p29_p1 = scmp.ge.s32.totalorder %s27_s21, 2  ;;  %p208_p2 = scmp.lt.s32.totalorder %s695_s20, 3 }
   0x5   : > { %s820_s21 = smov (%p29_p1, %s27_s21), 0  ;;  %p209_p3 = pnand %p585_p0, %p208_p2 }
   0x6   : > { %p244_p4 = scmp.lt.s32.totalorder (!%p209_p3), %s687_s18, 1 }
   0x7   : > { %212 = sbr.rel (%p209_p3) target bundleno = 701 (0x2bd), region = 40 }
   0xc   : > { %v270_v0 = vld [vmem:[%s812_s1 + $0x28] sm:$0xff]  ;;  %v269_v1 = vld [vmem:[%s812_s1 + $0x20] sm:$0xff]  ;;  %v268_v2 = vld [vmem:[%s812_s1 + $0x18] sm:$0xff]  ;;  %s822_s18 = smov (!%p244_p4, %s687_s18), 1  ;;  %vm278_vm0 = vcmask 392192   ;;  %vm376_vm1 = vcmask 785408  }
   0xd   : > { %609 = vmatprep.subr.mxu0 %v270_v0  ;;  %627 = vmatprep.subr.mxu1 %v270_v0  ;;  %v267_v3 = vld [vmem:[%s812_s1 + $0x10] sm:$0xff]  ;;  %s598_s30 = sshll.u32 %s822_s18, 5  ;;  %v266_v4 = vld [vmem:[%s812_s1 + $0x8] sm:$0xff]  ;;  %v265_v5 = vld [vmem:[%s812_s1] sm:$0xff]  ;;  %vm386_vm2 = vcmask 778240   ;;  %s639_s23 = smul.u32 96, %s822_s18 }
   0xe   : > { %610 = vmatpush3.msra.mxu0 %v270_v0  ;;  %633 = vmatpush3.msra.mxu1 %v270_v0  ;;  %s251_s10 = scalar_lea.vmem %s811_s0, %s598_s30  ;;  %v589_v12 = vld [vmem:[%s813_s2] ss:$0 sm:$0xff]  ;;  %vm485_vm3 = vcmask 203776  }
   0xf   : > { %611 = vmatprep.subr.mxu0 %v269_v1  ;;  %628 = vmatprep.subr.mxu1 %v269_v1  ;;  %v261_v6 = vld [vmem:[%s251_s10] sm:$0xff]  ;;  %v263_v7 = vld [vmem:[%s251_s10 + $0x10] sm:$0xff]  ;;  %v262_v8 = vld [vmem:[%s251_s10 + $0x8] sm:$0xff]  ;;  %s260_s26 = scalar_lea.vmem %s816_s5, %s639_s23 }
  0x10   : > { %612 = vmatpush3.msra.mxu0 %v269_v1  ;;  %634 = vmatpush3.msra.mxu1 %v269_v1  ;;  %v264_v9 = vld [vmem:[%s251_s10 + $0x18] sm:$0x1]  ;;  %v594_v56 = vld [vmem:[%s814_s3] ss:$0 sm:$0xff] }
  0x11   : > { %613 = vmatprep.subr.mxu0 %v268_v2  ;;  %629 = vmatprep.subr.mxu1 %v268_v2  ;;  %v595_v58 = vld [vmem:[%s815_s4] ss:$0 sm:$0xff] }
  0x12   : > { %614 = vmatpush3.msra.mxu0 %v268_v2  ;;  %635 = vmatpush3.msra.mxu1 %v268_v2 }
  0x13   : > { %615 = vmatprep.subr.mxu0 %v267_v3  ;;  %630 = vmatprep.subr.mxu1 %v267_v3 }
  0x14   : > { %616 = vmatpush3.msra.mxu0 %v267_v3  ;;  %636 = vmatpush3.msra.mxu1 %v267_v3 }
  0x15   : > { %617 = vmatprep.subr.mxu0 %v266_v4  ;;  %631 = vmatprep.subr.mxu1 %v266_v4 }
  0x16   : > { %618 = vmatpush3.msra.mxu0 %v266_v4  ;;  %637 = vmatpush3.msra.mxu1 %v266_v4 }
  0x17   : > { %619 = vmatprep.subr.mxu0 %v265_v5  ;;  %632 = vmatprep.subr.mxu1 %v265_v5 }
  0x18   : > { %620 = vmatpush3.msra.mxu0 %v265_v5  ;;  %638 = vmatpush3.msra.mxu1 %v265_v5 }
  0x19   : > { %621 = vmatprep.mubr.msk.f32.mxu0 %vm278_vm0, %v261_v6  ;;  %624 = vmatprep.mubr.msk.f32.mxu1 %vm278_vm0, %v263_v7 }
  0x1a   : > { %622 = vmatmul.mubr.msk.f32.vlgmr.msra.gmra.mxu0 %vm278_vm0, %v262_v8  ;;  %625 = vmatmul.mubr.msk.f32.vlgmr.msra.gmra.mxu1 %vm278_vm0, %v264_v9 }
  0xda   : > { %v623_v10 = vpop.f32.mrf.mxu0  ;;  %v626_v11 = vpop.f32.mrf.mxu1 }
  0xdb   : > { %v373_v15 = vadd.f32 %v626_v11, %v589_v12  ;;  %v363_v18 = vadd.f32 %v623_v10, %v589_v12 }
  0xdc   : > { %v357_v13 = vpop.f32.mrf.mxu0  ;;  %v367_v14 = vpop.f32.mrf.mxu1 }
  0xdd   : > { %v358_v16 = vadd.f32 %v589_v12, %v357_v13  ;;  %v368_v17 = vadd.f32 %v589_v12, %v367_v14  ;;  %v387_v21 = vsel %vm386_vm2, %v373_v15, 0.0  ;;  %v380_v22 = vsel %vm376_vm1, %v363_v18, 0.0 }
  0xdf   : > { %v383_v19 = vsel %vm376_vm1, %v368_v17, 0.0  ;;  %v377_v20 = vsel %vm376_vm1, %v358_v16, 0.0 }
  0xe0   : > { %384 = vadd.xlane.f32.xlu1 %v383_v19  ;;  %378 = vadd.xlane.f32.xlu0 %v377_v20 }
  0xe4   : > { %388 = vadd.xlane.f32.xlu1 %v387_v21  ;;  %381 = vadd.xlane.f32.xlu0 %v380_v22 }
 0x169   : > { %v385_v23 = vpop.xlane.xlu1 %384  ;;  %v379_v24 = vpop.xlane.xlu0 %378 }
 0x16a   : > { %v393_v25 = vmul.f32 0.010416667, %v385_v23  ;;  %v391_v26 = vmul.f32 0.010416667, %v379_v24 }
 0x16c   : > { %v397_v27 = vsub.f32 %v368_v17, %v393_v25  ;;  %v395_v28 = vsub.f32 %v358_v16, %v391_v26 }
 0x16d   : > { %v389_v29 = vpop.xlane.xlu1 %388  ;;  %v382_v30 = vpop.xlane.xlu0 %381 }
 0x16e   : > { %v394_v31 = vmul.f32 0.010416667, %v389_v29  ;;  %v392_v32 = vmul.f32 0.010416667, %v382_v30  ;;  %v399_v33 = vmul.f32 %v395_v28, %v395_v28  ;;  %v401_v37 = vmul.f32 %v397_v27, %v397_v27 }
 0x170   : > { %v398_v34 = vsub.f32 %v373_v15, %v394_v31  ;;  %v396_v35 = vsub.f32 %v363_v18, %v392_v32  ;;  %v403_v36 = vsel %vm376_vm1, %v399_v33, 0.0  ;;  %v409_v39 = vsel %vm376_vm1, %v401_v37, 0.0 }
 0x171   : > { %404 = vadd.xlane.f32.xlu0 %v403_v36 }
 0x172   : > { %v400_v38 = vmul.f32 %v396_v35, %v396_v35  ;;  %v402_v41 = vmul.f32 %v398_v34, %v398_v34 }
 0x174   : > { %v406_v40 = vsel %vm376_vm1, %v400_v38, 0.0  ;;  %v412_v42 = vsel %vm386_vm2, %v402_v41, 0.0 }
 0x175   : > { %410 = vadd.xlane.f32.xlu0 %v409_v39  ;;  %407 = vadd.xlane.f32.xlu1 %v406_v40 }
 0x179   : > { %413 = vadd.xlane.f32.xlu1 %v412_v42 }
 0x1fa   : > { %v405_v43 = vpop.xlane.xlu0 %404 }
 0x1fb   : > { %v415_v44 = vmul.f32 0.010416667, %v405_v43 }
 0x1fd   : > { %v419_v45 = vadd.f32 1e-05, %v415_v44 }
 0x1fe   : > { %v408_v46 = vpop.xlane.xlu1 %407  ;;  %v411_v47 = vpop.xlane.xlu0 %410 }
 0x1ff   : > { %665 = vrsqrt.f32 %v419_v45  ;;  %v416_v48 = vmul.f32 0.010416667, %v408_v46  ;;  %v417_v49 = vmul.f32 0.010416667, %v411_v47 }
 0x201   : > { %v420_v50 = vadd.f32 1e-05, %v416_v48  ;;  %v421_v51 = vadd.f32 1e-05, %v417_v49 }
 0x202   : > { %v414_v52 = vpop.xlane.xlu1 %413 }
 0x203   : > { %667 = vrsqrt.f32 %v420_v50  ;;  %v418_v53 = vmul.f32 0.010416667, %v414_v52 }
 0x204   : > { %669 = vrsqrt.f32 %v421_v51 }
 0x205   : > { %v422_v54 = vadd.f32 1e-05, %v418_v53 }
 0x207   : > { %671 = vrsqrt.f32 %v422_v54 }
 0x20c   : > { %v666_v55 = vpop.eup %665 }
 0x20d   : > { %v427_v57 = vmul.f32 %v666_v55, %v395_v28 }
 0x20f   : > { %v438_v59 = vmul.f32 %v594_v56, %v427_v57 }
 0x210   : > { %v668_v60 = vpop.eup %667 }
 0x211   : > { %v670_v61 = vpop.eup %669  ;;  %v449_v62 = vadd.f32 %v595_v58, %v438_v59  ;;  %v428_v63 = vmul.f32 %v668_v60, %v396_v35 }
 0x212   : > { %v429_v0 = vmul.f32 %v670_v61, %v397_v27 }
 0x213   : > { %453 = vxpose.xlu0.b32.start [1/4] (short) (narrow) %v449_v62, 96  ;;  %v439_v1 = vmul.f32 %v594_v56, %v428_v63 }
 0x214   : > { %v672_v2 = vpop.eup %671  ;;  %v440_v4 = vmul.f32 %v594_v56, %v429_v0 }
 0x215   : > { %v450_v3 = vadd.f32 %v595_v58, %v439_v1  ;;  %v430_v5 = vmul.f32 %v672_v2, %v398_v34 }
 0x216   : > { %v451_v6 = vadd.f32 %v595_v58, %v440_v4 }
 0x217   : > { %454 = vxpose.xlu0.b32.cont [2/4] (short) (narrow) %v450_v3, 96  ;;  %v441_v7 = vmul.f32 %v594_v56, %v430_v5 }
 0x219   : > { %v452_v8 = vadd.f32 %v595_v58, %v441_v7 }
 0x21b   : > { %455 = vxpose.xlu0.b32.cont [3/4] (short) (narrow) %v451_v6, 96 }
 0x21f   : > { %456 = vxpose.xlu0.b32.end [4/4] (short) (narrow) %v452_v8, 96 }
 0x28f   : > { %v469_v9 = vpop.trf.xlu0 }
 0x290   : > { %486 = vst.msk [vmem:[%s260_s26] sm:$0xff] %vm485_vm3, %v469_v9 }
 0x293   : > { %v470_v10 = vpop.trf.xlu0 }
 0x294   : > { %487 = vst.msk [vmem:[%s260_s26 + $0x8] sm:$0xff] %vm485_vm3, %v470_v10 }
 0x297   : > { %v471_v11 = vpop.trf.xlu0 }
 0x298   : > { %488 = vst.msk [vmem:[%s260_s26 + $0x10] sm:$0xff] %vm485_vm3, %v471_v11 }
 0x29b   : > { %v472_v12 = vpop.trf.xlu0 }
 0x29c   : > { %489 = vst.msk [vmem:[%s260_s26 + $0x18] sm:$0xff] %vm485_vm3, %v472_v12 }
 0x29f   : > { %v473_v13 = vpop.trf.xlu0 }
 0x2a0   : > { %490 = vst.msk [vmem:[%s260_s26 + $0x20] sm:$0xff] %vm485_vm3, %v473_v13 }
 0x2a3   : > { %v474_v14 = vpop.trf.xlu0 }
 0x2a4   : > { %491 = vst.msk [vmem:[%s260_s26 + $0x28] sm:$0xff] %vm485_vm3, %v474_v14 }
 0x2a7   : > { %v475_v15 = vpop.trf.xlu0 }
 0x2a8   : > { %492 = vst.msk [vmem:[%s260_s26 + $0x30] sm:$0xff] %vm485_vm3, %v475_v15 }
 0x2ab   : > { %v476_v16 = vpop.trf.xlu0 }
 0x2ac   : > { %493 = vst.msk [vmem:[%s260_s26 + $0x38] sm:$0xff] %vm485_vm3, %v476_v16 }
 0x2af   : > { %v477_v17 = vpop.trf.xlu0 }
 0x2b0   : > { %494 = vst.msk [vmem:[%s260_s26 + $0x40] sm:$0xff] %vm485_vm3, %v477_v17 }
 0x2b3   : > { %v478_v18 = vpop.trf.xlu0 }
 0x2b4   : > { %495 = vst.msk [vmem:[%s260_s26 + $0x48] sm:$0xff] %vm485_vm3, %v478_v18 }
 0x2b7   : > { %v479_v19 = vpop.trf.xlu0 }
 0x2b8   : > { %496 = vst.msk [vmem:[%s260_s26 + $0x50] sm:$0xff] %vm485_vm3, %v479_v19 }
 0x2bb   : > { %v480_v20 = vpop.trf.xlu0 }
 0x2bc   : > { %497 = vst.msk [vmem:[%s260_s26 + $0x58] sm:$0xff] %vm485_vm3, %v480_v20 }
 0x2bd PF: > { %s15_s20 = sadd.s32 1, %s695_s20   ;;  %s817_s18 = smov %s691_s19 }
 0x2be   : > { %p12_p5 = scmp.ge.s32.totalorder %s15_s20, 4   ;;  %s818_s19 = smov %s820_s21 }
 0x2c0   :  { %14 = sbr.rel (!%p12_p5) target bundleno = 2 (0x2), region = 70 }

</bundles_post_ra>
